<compile_context>
chip_gen: v6e
topology: v6e:2x2x1
jax: 0.10.0
libtpu: 0.0.40
codegen_flags: <defaults>
</compile_context>

<pallas_src>
import jax
import jax.numpy as jnp
from jax.experimental import pallas as pl
from jax.experimental.pallas import tpu as pltpu

# Fixed output size hard-coded in SignatureCenterNet.forward (F.interpolate size).
H_OUT, W_OUT = 936, 662
TH_PIX = 312        # H tile: 936 = 3 * 312, multiple of 8; block = 312*662*4B ~ 826 KB
LANE_TILE = 2048    # lane tile for the 1x1 conv (multiple of 128); block stays << VMEM


# ----------------------------------------------------------------------------
# Kernel 1: final_layer = nn.Conv2d(64, 1, kernel_size=1)
#   out[n, 0, hw] = sum_c feat[n, c, hw] * w[c] + b
# VPU multiply + sublane (C) reduce on native NCHW layout; lane-dense output.
# ----------------------------------------------------------------------------
def _conv1x1_kernel(feat_ref, w_ref, b_ref, out_ref):
    # feat: (1, C, T) VMEM, w: (C, 1) VMEM, b: (1, 1) SMEM, out: (1, 1, T) VMEM
    f = feat_ref[...]                                   # (1, C, T)
    w = w_ref[...]                                      # (C, 1)
    out_ref[...] = jnp.sum(f * w[None], axis=1, keepdims=True) + b_ref[0, 0]


def final_conv1x1(feat_nchw, weight, bias):
    """feat_nchw: (N, 64, H, W); weight: (1, 64, 1, 1); bias: (1,) -> (N, 1, H, W)."""
    n, c, h, w = feat_nchw.shape
    hw = h * w
    # Merge H,W (contiguous reshape: no HBM transpose / extra copy) so the output
    # last dim is lane-dense instead of a masked (M, 1) store.
    feat3d = feat_nchw.reshape(n, c, hw)
    w2d = weight.reshape(c, 1).astype(jnp.float32)      # (C, 1), resident (const map)
    b2d = bias.reshape(1, 1).astype(jnp.float32)        # (1, 1) scalar -> SMEM
    # Lane tile: either the full hw (legal as full-extent block) or a multiple of 128.
    tile = hw if hw <= LANE_TILE else LANE_TILE
    out3d = pl.pallas_call(
        _conv1x1_kernel,
        out_shape=jax.ShapeDtypeStruct((n, 1, hw), jnp.float32),
        grid=(n, pl.cdiv(hw, tile)),
        in_specs=[
            pl.BlockSpec((1, c, tile), lambda b, m: (b, 0, m)),
            pl.BlockSpec((c, 1), lambda b, m: (0, 0)),
            pl.BlockSpec(memory_space=pltpu.MemorySpace.SMEM),
        ],
        out_specs=pl.BlockSpec((1, 1, tile), lambda b, m: (b, 0, m)),
        compiler_params=pltpu.CompilerParams(
            dimension_semantics=("parallel", "parallel")),
    )(feat3d, w2d, b2d)
    return out3d.reshape(n, 1, h, w)


# ----------------------------------------------------------------------------
# Kernel 2: SinglePixelModel override:  out = 0;  out[..., px, py] = 1
# Write-only (no heatmap read), px/py as SMEM scalars (no recompile per pixel).
# Tiles that do not contain row px are a pure zero fill; only the hit tile pays
# for the iota/compare mask.  Every tile is written exactly once (full-block
# stores only -> unmasked vst wherever the 662-wide rows allow).
# ----------------------------------------------------------------------------
def _single_pixel_kernel(pxy_ref, out_ref):
    # pxy_ref: SMEM int32[2]; out block: (1, 1, TH, W_OUT) in NCHW.
    px = pxy_ref[0]
    py = pxy_ref[1]
    th = out_ref.shape[2]
    h0 = pl.program_id(1) * th
    hit = (px >= h0) & (px < h0 + th)

    @pl.when(jnp.logical_not(hit))
    def _():
        # Target row not in this H tile: broadcast zero fill, no per-element mask work.
        out_ref[...] = jnp.zeros_like(out_ref)

    @pl.when(hit)
    def _():
        rows = jax.lax.broadcasted_iota(jnp.int32, out_ref.shape, 2)
        cols = jax.lax.broadcasted_iota(jnp.int32, out_ref.shape, 3)
        mask = (rows == (px - h0)) & (cols == py)
        out_ref[...] = mask.astype(jnp.float32)


def single_pixel_heatmap(n, pixel_xy, th=TH_PIX):
    """Return (n, 1, 936, 662) float32 zeros with a 1 at [..., px, py]."""
    pixel_xy = jnp.asarray(pixel_xy, dtype=jnp.int32).reshape(2)
    assert H_OUT % th == 0 and th % 8 == 0
    return pl.pallas_call(
        _single_pixel_kernel,
        out_shape=jax.ShapeDtypeStruct((n, 1, H_OUT, W_OUT), jnp.float32),
        grid_spec=pltpu.PrefetchScalarGridSpec(
            num_scalar_prefetch=1,
            grid=(n, H_OUT // th),
            in_specs=[],
            out_specs=pl.BlockSpec((1, 1, th, W_OUT),
                                   lambda b, hblk, pxy: (b, 0, hblk, 0)),
        ),
        compiler_params=pltpu.CompilerParams(
            dimension_semantics=("parallel", "parallel")),
    )(pixel_xy)


# ----------------------------------------------------------------------------
# Model wrapper
# ----------------------------------------------------------------------------
def single_pixel_model_forward(x, params, px, py):
    """SinglePixelModel.forward: (N,3,H,W) -> (N,1,936,662), zeros except 1 at [...,px,py].

    The backbone / deconv stack / final 1x1 conv / bilinear resize are all multiplied
    by 0 in SinglePixelModel, so the result is independent of them; the write-only
    Pallas kernel reproduces the exact output without reading (or computing) the
    upstream heatmap.  `final_conv1x1` implements SignatureCenterNet.final_layer as a
    Pallas kernel and is exercised separately in __main__.
    """
    del params  # TODO(synk): backbone/deconv/final conv/resize elided (output is zeroed anyway).
    n = x.shape[0]
    # Mirror PyTorch indexing bounds behavior when the coordinates are static ints.
    if isinstance(px, int) and not (-H_OUT <= px < H_OUT):
        raise IndexError(f"single_pixel_x={px} out of range for dim of size {H_OUT}")
    if isinstance(py, int) and not (-W_OUT <= py < W_OUT):
        raise IndexError(f"single_pixel_y={py} out of range for dim of size {W_OUT}")
    pxy = jnp.asarray([px, py], dtype=jnp.int32)
    pxy = jnp.where(pxy < 0, pxy + jnp.asarray([H_OUT, W_OUT], jnp.int32), pxy)
    return single_pixel_heatmap(n, pxy)


if __name__ == "__main__":
    key = jax.random.PRNGKey(0)
    k_x, k_feat, k_w, k_b = jax.random.split(key, 4)

    # Small, module-consistent shapes: the final 1x1 conv requires 64 in-channels.
    N, H_IN, W_IN = 2, 64, 64
    FH, FW, FC = 16, 16, 64
    PX, PY = 100, 200  # single_pixel_x, single_pixel_y

    x = jax.random.normal(k_x, (N, 3, H_IN, W_IN), dtype=jnp.float32)
    params = {
        "synthetic_features": jax.random.normal(k_feat, (N, FC, FH, FW), jnp.float32),
        "final_w": 0.05 * jax.random.normal(k_w, (1, FC, 1, 1), jnp.float32),
        "final_b": 0.01 * jax.random.normal(k_b, (1,), jnp.float32),
    }

    # --- exercise the final_layer (1x1 conv) Pallas kernel & verify ---
    conv_out = jax.block_until_ready(
        final_conv1x1(params["synthetic_features"], params["final_w"], params["final_b"]))
    conv_ref = (params["synthetic_features"] * params["final_w"].reshape(1, FC, 1, 1)
                ).sum(axis=1, keepdims=True) + params["final_b"].reshape(1, 1, 1, 1)
    assert conv_out.shape == (N, 1, FH, FW)
    assert jnp.allclose(conv_out, conv_ref, atol=1e-5, rtol=1e-5)

    # --- full SinglePixelModel forward (write-only single-pixel kernel) ---
    out = jax.block_until_ready(single_pixel_model_forward(x, params, PX, PY))

    assert out.shape == (N, 1, H_OUT, W_OUT) and out.dtype == jnp.float32
    assert float(jnp.sum(out)) == float(N)               # exactly N ones
    assert float(out[0, 0, PX, PY]) == 1.0
    assert float(out[1, 0, PX, PY]) == 1.0

    # Check another (negative) pixel coordinate without recompiling semantics.
    out2 = jax.block_until_ready(single_pixel_model_forward(x, params, -1, -1))
    assert float(out2[0, 0, H_OUT - 1, W_OUT - 1]) == 1.0
    assert float(jnp.sum(out2)) == float(N)

    print("KERNEL_OK")
</pallas_src>

<mosaic_0001>
module attributes {stable_mosaic.version = 11 : i64} {
  func.func @_conv1x1_kernel(%arg0: i32, %arg1: i32, %arg2: memref<1x64x256xf32, #tpu.memory_space<vmem>>, %arg3: memref<64x1xf32, #tpu.memory_space<vmem>>, %arg4: memref<1x1xf32, #tpu.memory_space<smem>>, %arg5: memref<1x1x256xf32, #tpu.memory_space<vmem>>) attributes {dimension_semantics = [#tpu.dimension_semantics<parallel>, #tpu.dimension_semantics<parallel>], iteration_bounds = array<i64: 2, 1>, scalar_prefetch = 0 : i64, scratch_operands = 0 : i64, tpu.core_type = #tpu.core_type<tc>, window_params = [{transform_indices = @transform_0, window_bounds = array<i64: 1, 64, 256>}, {pipeline_mode = #tpu.pipeline_mode<synchronous>, transform_indices = @transform_1, window_bounds = array<i64: 64, 1>}, {transform_indices = @transform_2, window_bounds = array<i64: 1, 1>}, {transform_indices = @transform_3, window_bounds = array<i64: 1, 1, 256>}]} {
    %c0 = arith.constant 0 : index
    %c0_0 = arith.constant 0 : index
    %c0_1 = arith.constant 0 : index
    %0 = vector.load %arg2[%c0, %c0_0, %c0_1] : memref<1x64x256xf32, #tpu.memory_space<vmem>>, vector<1x64x256xf32>
    %c0_2 = arith.constant 0 : index
    %c0_3 = arith.constant 0 : index
    %1 = vector.load %arg3[%c0_2, %c0_3] : memref<64x1xf32, #tpu.memory_space<vmem>>, vector<64x1xf32>
    %2 = vector.shape_cast %1 : vector<64x1xf32> to vector<1x64x1xf32>
    %3 = vector.broadcast %2 : vector<1x64x1xf32> to vector<1x64x256xf32>
    %4 = arith.mulf %0, %3 : vector<1x64x256xf32>
    %cst = arith.constant dense<0.000000e+00> : vector<1x256xf32>
    %5 = vector.multi_reduction <add>, %4, %cst [1] : vector<1x64x256xf32> to vector<1x256xf32>
    %6 = vector.shape_cast %5 : vector<1x256xf32> to vector<1x1x256xf32>
    %c0_4 = arith.constant 0 : index
    %c0_5 = arith.constant 0 : index
    %7 = memref.load %arg4[%c0_4, %c0_5] : memref<1x1xf32, #tpu.memory_space<smem>>
    %8 = vector.broadcast %7 : f32 to vector<1x1x256xf32>
    %9 = arith.addf %6, %8 : vector<1x1x256xf32>
    %c0_6 = arith.constant 0 : index
    %c0_7 = arith.constant 0 : index
    %c0_8 = arith.constant 0 : index
    %10 = vector.load %arg5[%c0_6, %c0_7, %c0_8] : memref<1x1x256xf32, #tpu.memory_space<vmem>>, vector<1x1x256xf32>
    tpu.vector_store %arg5[%c0_6, %c0_7, %c0_8], %9 {strides = array<i32>} : memref<1x1x256xf32, #tpu.memory_space<vmem>>, vector<1x1x256xf32>,
    return
  }
  func.func @transform_0(%arg0: i32, %arg1: i32) -> (i32, i32, i32) {
    %c0_i32 = arith.constant 0 : i32
    %c0_i32_0 = arith.constant 0 : i32
    return %arg0, %c0_i32, %arg1 : i32, i32, i32
  }
  func.func @transform_1(%arg0: i32, %arg1: i32) -> (i32, i32) {
    %c0_i32 = arith.constant 0 : i32
    %c0_i32_0 = arith.constant 0 : i32
    %c0_i32_1 = arith.constant 0 : i32
    return %c0_i32, %c0_i32_0 : i32, i32
  }
  func.func @transform_2(%arg0: i32, %arg1: i32) -> (i32, i32) {
    %c0_i32 = arith.constant 0 : i32
    %c0_i32_0 = arith.constant 0 : i32
    %c0_i32_1 = arith.constant 0 : i32
    return %c0_i32, %c0_i32_0 : i32, i32
  }
  func.func @transform_3(%arg0: i32, %arg1: i32) -> (i32, i32, i32) {
    %c0_i32 = arith.constant 0 : i32
    %c0_i32_0 = arith.constant 0 : i32
    return %arg0, %c0_i32, %arg1 : i32, i32, i32
  }
}

</mosaic_0001>

<bundles_post_ra>
// kernel: tpu_custom_call.1
= control target key start
LH: loop header
LB: loop body
LE: loop exit
PB: predicated region body
PF: predicated region fallthrough
CT: control target
= control target key end

     0   :  { %s843_s0 = inlined_call_operand.hbm [shape: f32[2,64,256], index: 0, kind: input, shape index: {}]   ;;  %s844_s1 = inlined_call_operand.vmem [shape: f32[64,1], index: 1, kind: input, shape index: {}]   ;;  %s845_s2 = inlined_call_operand.<no memory space> [shape: f32[1,1], index: 2, kind: input, shape index: {}]   ;;  %s846_s3 = inlined_call_operand.hbm [shape: f32[2,1,256], index: 3, kind: output, shape index: {}]  }
   0x1   :  { %8 = sst [smem:[#allocation2]] %s845_s2 }
   0x2   :  { %9 = vsyncpa [#allocation4], 0 }
   0x3   :  { %11 = vsyncpa [#allocation4 + $0x1], 0 }
   0x4   :  { %12 = vsyncpa [#allocation5], 0 }
   0x5   :  { %14 = vsyncpa [#allocation5 + $0x1], 0  ;;  %s668_s14 = smov 0   ;;  %s670_s15 = smov 0  }
   0x6   :  { %s672_s16 = smov 0   ;;  %s674_s17 = smov 0  }
   0x7   :  { %s676_s18 = smov 0   ;;  %s678_s19 = smov 0  }
   0x8 LB: > { %s444_s2 = sadd.s32 4294967295, %s637_s19   ;;  %s445_s20 = sadd.s32 4294967294, %s637_s19   ;;  %s637_s19 = sphi %s678_s19, %s20_s19   ;;  %s633_s18 = sphi %s676_s18, %s857_s18   ;;  %s629_s17 = sphi %s674_s17, %s856_s17   ;;  %s625_s16 = sphi %s672_s16, %s855_s16   ;;  %s621_s15 = sphi %s670_s15, %s854_s15   ;;  %s617_s14 = sphi %s668_s14, %s853_s14  }
   0x9   : > { %s32_s21 = sadd.s32 1, %s633_s18  ;;  %s41_s22 = sadd.s32 1, %s625_s16 }
   0xa   : > { %p34_p0 = scmp.ge.s32.totalorder %s32_s21, 2  ;;  %p48_p1 = scmp.ne.s32.totalorder %s625_s16, %s621_s15 }
   0xb   : > { %p49_p2 = scmp.eq.s32.totalorder %s637_s19, 0  ;;  %p54_p3 = scmp.ne.s32.totalorder %s621_s15, %s617_s14 }
   0xc   : > { %s859_s21 = smov (%p34_p0, %s32_s21), 0  ;;  %p55_p5 = scmp.eq.s32.totalorder %s444_s2, 0 }
   0xd   : > { %p709_p4 = por %p49_p2, %p48_p1  ;;  %s36_s24 = ssub.s32 %s633_s18, %s859_s21 }
   0xe   : > { %p122_p6 = scmp.eq.s32.totalorder %s444_s2, 1  ;;  %p39_p7 = scmp.eq.s32.totalorder %s36_s24, 0 }
   0xf   : > { %p715_p8 = por %p55_p5, %p54_p3  ;;  %p128_p10 = scmp.eq.s32.totalorder %s445_s20, 1 }
  0x10   : > { %p719_p9 = por %p122_p6, %p48_p1  ;;  %p473_p13 = scmp.lt.s32.totalorder %s637_s19, 2 }
  0x11   : > { %s724_s27 = scalar_select %p39_p7, %s625_s16, %s41_s22  }
  0x12   : > { %p726_p11 = por %p128_p10, %p54_p3  ;;  %s154_s29 = sand.u32 1, %s625_s16  }
  0x13   : > { %s448_s30 = sshll.u32 %s154_s29, 7  ;;  %s459_s4 = sshll.u32 %s633_s18, 11 }
  0x14   : > { %s166_s7 = scalar_lea.hbm %s843_s0, %s459_s4  ;;  %s158_s8 = scalar_lea.vmem [#allocation3], %s448_s30 }
  0x15   : > { %s167_s9 = sshll.u32 %s158_s8, 4  ;;  %p739_p0 = pnand %p473_p13, %p709_p4  ;;  %s168_s9 = int_to_ptr.vmem [resolvable:$true] %s167_s9 }
  0x16   : > { %p451_p1 = scmp.ge.s32.totalorder %s637_s19, 1  ;;  %s155_s11 = scalar_lea.sflag [#allocation4], %s154_s29 }
  0x17   : > { %p531_p2 = pneg %p739_p0  ;;  %s542_s12 = scalar_lea.vmem %s168_s9, 2048 }
  0x18   : > { %p543_p3 = scmp.ne.s32.totalorder %s168_s9, %s542_s12  ;;  %s639_s13 = smov [#allocation3]  }
  0x19   : > { %s547_s2 = sshll.u32 %s639_s13, 4  ;;  %s548_s2 = int_to_ptr.vmem [resolvable:$false] %s547_s2 }
  0x1a   : > { %p545_p5 = pnand %p543_p3, %p531_p2  ;;  %s549_s20 = scalar_lea.vmem %s548_s2, 4096 }
  0x1b   : > { %p550_p7 = scmp.lt.s32.totalorder %s168_s9, %s548_s2  ;;  %p551_p10 = scmp.lt.s32.totalorder %s549_s20, %s542_s12 }
  0x1c   : > { %p546_p6 = pneg %p545_p5 }
  0x1d   : > { %p552_p12 = por %p551_p10, %p550_p7 }
  0x1f   : > { %p553_p4 = pnand %p552_p12, %p546_p6 }
  0x21   : > { %556 = shalt.err (!%p553_p4)
}
  0x22   : > { %s640_s22 = smov 256   ;;  %s641_s23 = smov 16  }
  0x23   : > { %468 = dma.hbm_to_vmem [thread:$0]  (!%p739_p0), %s166_s7, 2048, %s168_s9, %s155_s11, %s640_s22, %s640_s22, %s641_s23  }
  0x24   : > { %p175_p13 = scmp.lt.s32.totalorder %s637_s19, 3 }
  0x26   : > { %p176_p2 = pnand %p451_p1, %p175_p13 }
  0x27   : > { %s752_s24 = sand.u32 (!%p176_p2), 1, %s621_s15  }
  0x28   : > { %179 = sbr.rel (%p176_p2) target bundleno = 225 (0xe1), region = 32  ;;  %s452_s29 = sshll.u32 (!%p176_p2), %s752_s24, 7 }
  0x29   : > { %s182_s30 = scalar_lea.sflag (!%p176_p2), [#allocation4], %s752_s24  ;;  %s756_s4 = scalar_lea.vmem (!%p176_p2), [#allocation3], %s452_s29 }
  0x2d   : > { %608 = dma.done.wait (%p715_p8), %s182_s30, 2048  }
  0x2e   : > { %610 = vsyncadd (%p715_p8), %s182_s30, 4294965248  ;;  %v642_v0 = vmov 0   ;;  %v228_v1 = vld [vmem:[%s844_s1 + $0x10] sm:$0xff]  ;;  %v226_v2 = vld [vmem:[%s844_s1] sm:$0xff]  ;;  %s316_s5 = sld [smem:[#allocation2]]  ;;  %s460_s6 = sshll.u32 %s629_s17, 5 }
  0x2f   : > { %528 = vset.pattern.permute.xlu1 %v642_v0  ;;  %527 = vset.pattern.permute.xlu0 %v642_v0  ;;  %v229_v3 = vld [vmem:[%s844_s1 + $0x18] sm:$0xff]  ;;  %v227_v4 = vld [vmem:[%s844_s1 + $0x8] sm:$0xff]  ;;  %v230_v6 = vld [vmem:[%s844_s1 + $0x20] sm:$0xff]  ;;  %s358_s25 = scalar_lea.hbm %s846_s3, %s460_s6  ;;  %s344_s11 = scalar_lea.sflag [#allocation5], %s752_s24 }
  0x30   : > { %246 = vperm.xlu1 %528, %v228_v1   ;;  %236 = vperm.xlu0 %527, %v226_v2   ;;  %v231_v5 = vld [vmem:[%s844_s1 + $0x28] sm:$0xff]  ;;  %v233_v7 = vld [vmem:[%s844_s1 + $0x38] sm:$0xff]  ;;  %v232_v8 = vld [vmem:[%s844_s1 + $0x30] sm:$0xff]  ;;  %s644_s13 = smov [#allocation6]  }
  0x31   : > { %v210_v11 = vld [vmem:[%s756_s4] sm:$0xff]  ;;  %v211_v12 = vld [vmem:[%s756_s4 + $0x8] sm:$0xff]  ;;  %v212_v13 = vld [vmem:[%s756_s4 + $0x10] sm:$0xff]  ;;  %s561_s2 = sshll.u32 %s644_s13, 4  ;;  %s562_s2 = int_to_ptr.vmem [resolvable:$false] %s561_s2 }
  0x32   : > { %v213_v14 = vld [vmem:[%s756_s4 + $0x18] sm:$0xff]  ;;  %v214_v15 = vld [vmem:[%s756_s4 + $0x20] sm:$0xff]  ;;  %v215_v16 = vld [vmem:[%s756_s4 + $0x28] sm:$0xff]  ;;  %s563_s17 = scalar_lea.vmem %s562_s2, 64 }
  0x33   : > { %v216_v23 = vld [vmem:[%s756_s4 + $0x30] sm:$0xff]  ;;  %v217_v24 = vld [vmem:[%s756_s4 + $0x38] sm:$0xff]  ;;  %v218_v31 = vld [vmem:[%s756_s4 + $0x40] sm:$0xff] }
  0x34   : > { %251 = vperm.xlu1 %528, %v229_v3   ;;  %241 = vperm.xlu0 %527, %v227_v4   ;;  %v219_v32 = vld [vmem:[%s756_s4 + $0x48] sm:$0xff]  ;;  %v220_v37 = vld [vmem:[%s756_s4 + $0x50] sm:$0xff]  ;;  %v221_v38 = vld [vmem:[%s756_s4 + $0x58] sm:$0xff] }
  0x35   : > { %v222_v44 = vld [vmem:[%s756_s4 + $0x60] sm:$0xff]  ;;  %v223_v45 = vld [vmem:[%s756_s4 + $0x68] sm:$0xff]  ;;  %v224_v51 = vld [vmem:[%s756_s4 + $0x70] sm:$0xff] }
  0x36   : > { %v225_v52 = vld [vmem:[%s756_s4 + $0x78] sm:$0xff]  ;;  %s453_s4 = sshll.u32 %s752_s24, 1 }
  0x37   : > { %s207_s7 = scalar_lea.vmem [#allocation6], %s453_s4 }
  0x38   : > { %261 = vperm.xlu1 %528, %v231_v5   ;;  %256 = vperm.xlu0 %527, %v230_v6   ;;  %v643_v5 = vmov 1966171168   ;;  %s360_s8 = sshll.u32 %s207_s7, 4  ;;  %s361_s8 = int_to_ptr.vmem [resolvable:$true] %s360_s8 }
  0x39   : > { %v324_v6 = vunpack.c.l.s4 %v643_v5  ;;  %s557_s12 = scalar_lea.vmem %s361_s8, 32  ;;  %p564_p1 = scmp.lt.s32.totalorder %s361_s8, %s562_s2 }
  0x3a   : > { %p558_p8 = scmp.ne.s32.totalorder %s361_s8, %s557_s12  ;;  %p565_p3 = scmp.lt.s32.totalorder %s563_s17, %s557_s12 }
  0x3c   : > { %271 = vperm.xlu1 %528, %v233_v7   ;;  %266 = vperm.xlu0 %527, %v232_v8   ;;  %v326_v7 = vlaneseq  ;;  %p559_p12 = pnand %p558_p8, %p719_p9  ;;  %p566_p5 = por %p565_p3, %p564_p1 }
  0x3e   : > { %vm340_vm0 = vcmp.lt.s32.totalorder %v326_v7, 256  ;;  %p560_p0 = pneg %p559_p12 }
  0x40   : > { %p567_p6 = pnand %p566_p5, %p560_p0 }
  0xab   : > { %v247_v9 = vpop.permute.xlu1 %246  ;;  %v237_v10 = vpop.permute.xlu0 %236 }
  0xac   : > { %v274_v19 = vmul.f32 %v237_v10, %v210_v11  ;;  %v275_v20 = vmul.f32 %v237_v10, %v211_v12  ;;  %v278_v25 = vmul.f32 %v247_v9, %v214_v15  ;;  %v279_v26 = vmul.f32 %v247_v9, %v215_v16 }
  0xad   : > { %v325_v12 = vunpack.c.0.s8 %v324_v6 }
  0xaf   : > { %v252_v17 = vpop.permute.xlu1 %251  ;;  %v242_v18 = vpop.permute.xlu0 %241 }
  0xb0   : > { %v276_v21 = vmul.f32 %v242_v18, %v212_v13  ;;  %v277_v22 = vmul.f32 %v242_v18, %v213_v14  ;;  %v280_v33 = vmul.f32 %v252_v17, %v216_v23  ;;  %v281_v34 = vmul.f32 %v252_v17, %v217_v24 }
  0xb1   : > { %v327_v13 = vshrl.u32 %v326_v7, 7  ;;  %v317_v14 = vstv %s316_s5 }
  0xb2   : > { %v290_v27 = vadd.f32 %v276_v21, %v274_v19  ;;  %v303_v28 = vadd.f32 %v277_v22, %v275_v20 }
  0xb3   : > { %v262_v29 = vpop.permute.xlu1 %261  ;;  %v257_v30 = vpop.permute.xlu0 %256  ;;  %v328_v19 = vsub.s32 %v325_v12, %v327_v13 }
  0xb4   : > { %v291_v35 = vadd.f32 %v290_v27, %v278_v25  ;;  %v304_v36 = vadd.f32 %v303_v28, %v279_v26  ;;  %v282_v39 = vmul.f32 %v257_v30, %v218_v31  ;;  %v283_v40 = vmul.f32 %v257_v30, %v219_v32 }
  0xb5   : > { %v284_v46 = vmul.f32 %v262_v29, %v220_v37  ;;  %v285_v47 = vmul.f32 %v262_v29, %v221_v38 }
  0xb6   : > { %v292_v41 = vadd.f32 %v291_v35, %v280_v33  ;;  %v305_v42 = vadd.f32 %v304_v36, %v281_v34 }
  0xb7   : > { %v267_v43 = vpop.permute.xlu0 %266  ;;  %v272_v50 = vpop.permute.xlu1 %271 }
  0xb8   : > { %v293_v48 = vadd.f32 %v292_v41, %v282_v39  ;;  %v306_v49 = vadd.f32 %v305_v42, %v283_v40  ;;  %v286_v53 = vmul.f32 %v267_v43, %v222_v44  ;;  %v287_v54 = vmul.f32 %v267_v43, %v223_v45 }
  0xb9   : > { %v288_v57 = vmul.f32 %v272_v50, %v224_v51  ;;  %v289_v58 = vmul.f32 %v272_v50, %v225_v52 }
  0xba   : > { %v294_v55 = vadd.f32 %v293_v48, %v284_v46  ;;  %v307_v56 = vadd.f32 %v306_v49, %v285_v47 }
  0xbc   : > { %v295_v59 = vadd.f32 %v294_v55, %v286_v53  ;;  %v308_v60 = vadd.f32 %v307_v56, %v287_v54 }
  0xbe   : > { %v296_v61 = vadd.f32 %v295_v59, %v288_v57  ;;  %v309_v62 = vadd.f32 %v308_v60, %v289_v58 }
  0xc0   : > { %v297_v63 = vrot.slane %v296_v61, 4  ;;  %v310_v0 = vrot.slane %v309_v62, 4 }
  0xc2   : > { %v298_v1 = vadd.f32 %v297_v63, %v296_v61  ;;  %v311_v2 = vadd.f32 %v310_v0, %v309_v62 }
  0xc4   : > { %v299_v3 = vrot.slane %v298_v1, 2  ;;  %v312_v4 = vrot.slane %v311_v2, 2 }
  0xc6   : > { %v300_v8 = vadd.f32 %v299_v3, %v298_v1  ;;  %v313_v9 = vadd.f32 %v312_v4, %v311_v2 }
  0xc8   : > { %v301_v10 = vrot.slane %v300_v8, 1  ;;  %v314_v11 = vrot.slane %v313_v9, 1 }
  0xca   : > { %v302_v15 = vadd.f32 %v301_v10, %v300_v8  ;;  %v315_v16 = vadd.f32 %v314_v11, %v313_v9 }
  0xcc   : > { %v318_v17 = vadd.f32 %v317_v14, %v302_v15  ;;  %v319_v18 = vadd.f32 %v317_v14, %v315_v16 }
  0xce   : > { %v322_v20 = vcombine.low %v318_v17, %v319_v18 }
  0xd0   : > { %v329_v21 = vrot.slane %v322_v20, %v328_v19 }
  0xd2   : > { %v336_v22 = vrot.slane %v329_v21, %v328_v19 }
  0xd4   : > { %342 = vst.msk [vmem:[%s207_s7] sm:$0x3] %vm340_vm0, %v336_v22 }
  0xd5   : > { %570 = shalt.err (!%p567_p6)
}
  0xd6   : > { %s571_s20 = scalar_lea.hbm %s358_s25, 32  ;;  %s575_s23 = scalar_lea.hbm %s846_s3, 64 }
  0xd7   : > { %p572_p7 = scmp.ne.s32.totalorder %s358_s25, %s571_s20  ;;  %p576_p13 = scmp.lt.s32.totalorder %s358_s25, %s846_s3 }
  0xd8   : > { %p577_p2 = scmp.lt.s32.totalorder %s575_s23, %s571_s20 }
  0xd9   : > { %p573_p10 = pnand %p572_p7, %p719_p9 }
  0xda   : > { %p578_p8 = por %p577_p2, %p576_p13 }
  0xdb   : > { %p574_p4 = pneg %p573_p10 }
  0xdd   : > { %p579_p12 = pnand %p578_p8, %p574_p4 }
  0xdf   : > { %582 = shalt.err (!%p579_p12)
}
  0xe0   : > { %463 = dma.vmem_to_hbm [thread:$0]  (%p719_p9), %s361_s8, 32, %s358_s25, %s344_s11  }
  0xe1 PF: > { %s372_s5 = sand.u32 1, %s617_s14   ;;  %p852_p0 = scmp.ge.s32.totalorder %s637_s19, 2 }
  0xe2   : > { %s373_s4 = scalar_lea.sflag [#allocation5], %s372_s5 }
  0xe3   : > { %p470_p1 = pnand %p852_p0, %p726_p11 }
  0xe5   : > { %p471_p3 = pneg %p470_p1 }
  0xe7   : > { %612 = dma.done.wait (%p471_p3), %s373_s4, 32  }
  0xe8   : > { %614 = vsyncadd (%p471_p3), %s373_s4, 4294967264  ;;  %s20_s19 = sadd.s32 1, %s637_s19   ;;  %s853_s14 = smov %s621_s15 }
  0xe9   : > { %p17_p5 = scmp.ge.s32.totalorder %s20_s19, 4   ;;  %s854_s15 = smov %s625_s16 }
  0xea   : > { %s855_s16 = smov %s724_s27  ;;  %s856_s17 = smov %s633_s18 }
  0xeb   : > { %s857_s18 = smov %s859_s21  ;;  %19 = sbr.rel (!%p17_p5) target bundleno = 8 (0x8), region = 77 }
  0xf0   :  { %378 = vsyncpa [#allocation4], 1 }
  0xf1   :  { %380 = vsyncpa [#allocation4 + $0x1], 1 }
  0xf2   :  { %381 = vsyncpa [#allocation5], 1 }
  0xf3   :  { %383 = vsyncpa [#allocation5 + $0x1], 1 }

</bundles_post_ra>
